<compile_context>
chip_gen: v7x
topology: tpu7x:2x2x1
jax: 0.10.0
libtpu: 0.0.40
codegen_flags: <defaults>
</compile_context>

<pallas_src>
import functools
import math

import jax
import jax.numpy as jnp
from jax.experimental import pallas as pl
from jax.experimental.pallas import tpu as pltpu


_VMEM_LIMIT = 32 * 1024 * 1024   # raise v5e's 16 MiB scoped default; safe on v6e/v7x
_HEAD_PAD = 128                  # lane-dense head output width (slice to 2 outside)


def _row_tile(m):
    """Largest MXU-friendly row tile that divides m (falls back to full m)."""
    for t in (512, 256, 128, 64, 32, 16, 8):
        if m % t == 0:
            return t
    return m


# ----------------------------------------------------------------------------
# Pallas kernels
# ----------------------------------------------------------------------------
def _linear_kernel(x_ref, w_ref, b_ref, o_ref, *, activation):
    # x: (RB, K) bf16, w: (K, N) bf16, b: (1, N) f32 -> o: (RB, N) bf16
    y = jnp.dot(x_ref[...], w_ref[...],
                preferred_element_type=jnp.float32) + b_ref[...]
    if activation == "gelu":
        # tanh-approx GELU (EUP tanh slot); exact erf-GELU differs negligibly.
        y = jax.nn.gelu(y, approximate=True)
    o_ref[...] = y.astype(o_ref.dtype)


def _linear_res_ln_kernel(x_ref, w_ref, b_ref, res_ref, g_ref, beta_ref, o_ref,
                          *, eps):
    # Fused: LayerNorm(x @ w + b + residual); LN statistics computed in f32
    # over the full feature row (the row fits in the (RB, N) block).
    y = jnp.dot(x_ref[...], w_ref[...],
                preferred_element_type=jnp.float32) + b_ref[...]
    y = y + res_ref[...].astype(jnp.float32)
    mu = jnp.mean(y, axis=-1, keepdims=True)
    var = jnp.mean(jnp.square(y - mu), axis=-1, keepdims=True)
    y = (y - mu) * jax.lax.rsqrt(var + eps) * g_ref[...] + beta_ref[...]
    o_ref[...] = y.astype(o_ref.dtype)


def linear(x, w, b, activation="none"):
    """y = act(x @ w + b); x:(M,K) bf16, w:(K,N) bf16 (torch W^T), b:(1,N) f32.

    f32 MXU accumulation, fused activation epilogue, bf16 output store.
    """
    M, K = x.shape
    N = w.shape[1]
    RB = _row_tile(M)
    kern = functools.partial(_linear_kernel, activation=activation)
    cost = pl.CostEstimate(
        flops=2 * M * K * N,
        transcendentals=M * N if activation != "none" else 0,
        bytes_accessed=(M * K + K * N + M * N) * 2 + N * 4)
    return pl.pallas_call(
        kern,
        out_shape=jax.ShapeDtypeStruct((M, N), jnp.bfloat16),
        grid=(M // RB,),
        in_specs=[
            pl.BlockSpec((RB, K), lambda i: (i, 0)),
            pl.BlockSpec((K, N), lambda i: (0, 0)),
            pl.BlockSpec((1, N), lambda i: (0, 0)),
        ],
        out_specs=pl.BlockSpec((RB, N), lambda i: (i, 0)),
        compiler_params=pltpu.CompilerParams(
            dimension_semantics=("parallel",),
            vmem_limit_bytes=_VMEM_LIMIT),
        cost_estimate=cost,
    )(x, w, b)


def linear_residual_ln(x, w, b, res, g, beta, eps=1e-5):
    """LayerNorm(x @ w + b + res) fused in one kernel; bf16 output."""
    M, K = x.shape
    N = w.shape[1]
    RB = _row_tile(M)
    kern = functools.partial(_linear_res_ln_kernel, eps=eps)
    cost = pl.CostEstimate(
        flops=2 * M * K * N + 8 * M * N,
        transcendentals=M,
        bytes_accessed=(M * K + K * N + 2 * M * N) * 2 + 3 * N * 4)
    return pl.pallas_call(
        kern,
        out_shape=jax.ShapeDtypeStruct((M, N), jnp.bfloat16),
        grid=(M // RB,),
        in_specs=[
            pl.BlockSpec((RB, K), lambda i: (i, 0)),
            pl.BlockSpec((K, N), lambda i: (0, 0)),
            pl.BlockSpec((1, N), lambda i: (0, 0)),
            pl.BlockSpec((RB, N), lambda i: (i, 0)),
            pl.BlockSpec((1, N), lambda i: (0, 0)),
            pl.BlockSpec((1, N), lambda i: (0, 0)),
        ],
        out_specs=pl.BlockSpec((RB, N), lambda i: (i, 0)),
        compiler_params=pltpu.CompilerParams(
            dimension_semantics=("parallel",),
            vmem_limit_bytes=_VMEM_LIMIT),
        cost_estimate=cost,
    )(x, w, b, res, g, beta)


def _attn_kernel(q_ref, k_ref, v_ref, m_ref, o_ref, *, scale):
    # q/k/v blocks: (1, NH, S, DH) bf16; mask: (1, 1, 1, S) f32 additive.
    q = q_ref[0]                          # (NH, S, DH)
    k = k_ref[0]                          # (NH, S, DH)
    v = v_ref[0]                          # (NH, S, DH)
    m = m_ref[0]                          # (1, 1, S) broadcast over heads/queries
    s = jnp.einsum("hqd,hkd->hqk", q, k,
                   preferred_element_type=jnp.float32) * scale + m
    s = s - jnp.max(s, axis=-1, keepdims=True)
    p = jnp.exp(s)
    p = p * pl.reciprocal(jnp.sum(p, axis=-1, keepdims=True), approx=True)
    ctx = jnp.einsum("hqk,hkd->hqd", p.astype(v.dtype), v,
                     preferred_element_type=jnp.float32)
    o_ref[0] = ctx.astype(o_ref.dtype)


def attention(q, k, v, add_mask):
    """softmax(QK^T/sqrt(d) + mask) V; ALL heads of a batch row per grid step."""
    B, NH, S, DH = q.shape
    kern = functools.partial(_attn_kernel, scale=1.0 / math.sqrt(DH))
    qkv_spec = lambda: pl.BlockSpec((1, NH, S, DH), lambda b: (b, 0, 0, 0))
    return pl.pallas_call(
        kern,
        out_shape=jax.ShapeDtypeStruct((B, NH, S, DH), jnp.bfloat16),
        grid=(B,),
        in_specs=[
            qkv_spec(), qkv_spec(), qkv_spec(),
            pl.BlockSpec((1, 1, 1, S), lambda b: (b, 0, 0, 0)),
        ],
        out_specs=pl.BlockSpec((1, NH, S, DH), lambda b: (b, 0, 0, 0)),
        compiler_params=pltpu.CompilerParams(
            dimension_semantics=("parallel",),
            vmem_limit_bytes=_VMEM_LIMIT),
    )(q, k, v, add_mask)


def _head_kernel(h1_ref, h2_ref, h3_ref, h4_ref, w_ref, b_ref, o_ref):
    # TweetModel head: mean of the last 4 hidden states (f32), then Linear(H,2)
    # computed into a 128-lane padded output (unmasked stores).
    mean = (h1_ref[...].astype(jnp.float32) + h2_ref[...].astype(jnp.float32)
            + h3_ref[...].astype(jnp.float32)
            + h4_ref[...].astype(jnp.float32)) * 0.25
    # dropout(p=0.5) is inference-mode identity here.
    # TODO(synk): training-mode stochastic dropout not implemented.
    o_ref[...] = (
        jnp.dot(mean.astype(jnp.bfloat16), w_ref[...],
                preferred_element_type=jnp.float32) + b_ref[...]
    ).astype(o_ref.dtype)


def tweet_head(h1, h2, h3, h4, w_pad, b_pad, n_out):
    M, H = h1.shape
    RB = _row_tile(M)
    hspec = lambda: pl.BlockSpec((RB, H), lambda i: (i, 0))
    out = pl.pallas_call(
        _head_kernel,
        out_shape=jax.ShapeDtypeStruct((M, _HEAD_PAD), jnp.float32),
        grid=(M // RB,),
        in_specs=[
            hspec(), hspec(), hspec(), hspec(),
            pl.BlockSpec((H, _HEAD_PAD), lambda i: (0, 0)),
            pl.BlockSpec((1, _HEAD_PAD), lambda i: (0, 0)),
        ],
        out_specs=pl.BlockSpec((RB, _HEAD_PAD), lambda i: (i, 0)),
        compiler_params=pltpu.CompilerParams(
            dimension_semantics=("parallel",),
            vmem_limit_bytes=_VMEM_LIMIT),
    )(h1, h2, h3, h4, w_pad, b_pad)
    return out[:, :n_out]


# ----------------------------------------------------------------------------
# Mini RoBERTa (synthetic deterministic weights) + TweetModel forward
# ----------------------------------------------------------------------------
def layer_norm(x, g, b, eps=1e-5):
    # Plain-JAX LN, used only once for the embedding output.
    mu = jnp.mean(x, axis=-1, keepdims=True)
    var = jnp.mean((x - mu) ** 2, axis=-1, keepdims=True)
    return (x - mu) * jax.lax.rsqrt(var + eps) * g + b


def init_params(key, vocab, hidden, layers, heads, inter, max_pos):
    """Weights stored bf16, biases / LN params f32 (1,N); QKV fused at init."""
    def dense(k, din, dout, w_std=0.02, b_std=0.02):
        kw, kb = jax.random.split(k)
        w = jax.random.normal(kw, (din, dout), jnp.float32) * w_std
        b = jax.random.normal(kb, (dout,), jnp.float32) * b_std
        return w, b

    keys = jax.random.split(key, 6 + layers)
    p = {
        "word_emb": jax.random.normal(keys[0], (vocab, hidden), jnp.float32) * 0.02,
        "pos_emb": jax.random.normal(keys[1], (max_pos, hidden), jnp.float32) * 0.02,
        "type_emb": jax.random.normal(keys[2], (1, hidden), jnp.float32) * 0.02,
        "emb_ln_g": jnp.ones((hidden,), jnp.float32),
        "emb_ln_b": jnp.zeros((hidden,), jnp.float32),
        "layers": [],
    }
    for l in range(layers):
        lk = jax.random.split(keys[3 + l], 6)
        qw, qb = dense(lk[0], hidden, hidden)
        kw_, kb_ = dense(lk[1], hidden, hidden)
        vw, vb = dense(lk[2], hidden, hidden)
        ow, ob = dense(lk[3], hidden, hidden)
        f1w, f1b = dense(lk[4], hidden, inter)
        f2w, f2b = dense(lk[5], inter, hidden)
        p["layers"].append({
            "qkv_w": jnp.concatenate([qw, kw_, vw], axis=1).astype(jnp.bfloat16),
            "qkv_b": jnp.concatenate([qb, kb_, vb]).reshape(1, 3 * hidden),
            "o_w": ow.astype(jnp.bfloat16),
            "o_b": ob.reshape(1, hidden),
            "ln1_g": jnp.ones((1, hidden), jnp.float32),
            "ln1_b": jnp.zeros((1, hidden), jnp.float32),
            "fc1_w": f1w.astype(jnp.bfloat16),
            "fc1_b": f1b.reshape(1, inter),
            "fc2_w": f2w.astype(jnp.bfloat16),
            "fc2_b": f2b.reshape(1, hidden),
            "ln2_g": jnp.ones((1, hidden), jnp.float32),
            "ln2_b": jnp.zeros((1, hidden), jnp.float32),
        })
    pw, pb = dense(keys[3 + layers], hidden, hidden)
    p["pooler_w"], p["pooler_b"] = pw, pb
    # TweetModel.fc: nn.Linear(hidden, 2); weight std=0.02, bias ~ N(0, 1);
    # lane-padded to 128 once here (not per forward call).
    fcw, fcb = dense(keys[4 + layers], hidden, 2, w_std=0.02, b_std=1.0)
    p["fc_w_pad"] = jnp.zeros((hidden, _HEAD_PAD), jnp.bfloat16).at[:, :2].set(
        fcw.astype(jnp.bfloat16))
    p["fc_b_pad"] = jnp.zeros((1, _HEAD_PAD), jnp.float32).at[:, :2].set(fcb)
    return p


def roberta_encode(p, input_ids, attention_mask, heads):
    B, S = input_ids.shape
    H = p["word_emb"].shape[1]
    DH = H // heads

    # HF RoBERTa position ids start at padding_idx + 1 == 2.
    pos_ids = jnp.arange(S) + 2
    x = (p["word_emb"][input_ids]
         + p["pos_emb"][pos_ids][None, :, :]
         + p["type_emb"][0][None, None, :])
    x = layer_norm(x, p["emb_ln_g"], p["emb_ln_b"])
    x2 = x.reshape(B * S, H).astype(jnp.bfloat16)         # bf16 residual stream
    hidden_states = [x2]                                  # hs[0] = embeddings

    add_mask = ((1.0 - attention_mask.astype(jnp.float32)) * -1e9)
    add_mask = add_mask.reshape(B, 1, 1, S)

    for lp in p["layers"]:
        # Fused QKV projection (weights pre-concatenated at init).
        qkv = linear(x2, lp["qkv_w"], lp["qkv_b"])                 # (M, 3H) bf16
        # Single combined head split for q/k/v (one XLA transpose, no slices).
        qkv5 = qkv.reshape(B, S, 3, heads, DH).transpose(2, 0, 3, 1, 4)
        ctx = attention(qkv5[0], qkv5[1], qkv5[2], add_mask)       # (B,NH,S,DH)
        ctx2 = ctx.transpose(0, 2, 1, 3).reshape(B * S, H)
        # o-projection with fused residual-add + LayerNorm epilogue.
        x2 = linear_residual_ln(ctx2, lp["o_w"], lp["o_b"],
                                x2, lp["ln1_g"], lp["ln1_b"])
        h = linear(x2, lp["fc1_w"], lp["fc1_b"], activation="gelu")  # fused GELU
        # fc2 with fused residual-add + LayerNorm epilogue.
        x2 = linear_residual_ln(h, lp["fc2_w"], lp["fc2_b"],
                                x2, lp["ln2_g"], lp["ln2_b"])
        hidden_states.append(x2)
    return hidden_states


def tweet_model_forward(p, input_ids, attention_mask, heads):
    B, S = input_ids.shape
    hs = roberta_encode(p, input_ids, attention_mask, heads)
    H = p["word_emb"].shape[1]

    # pooled output ("len_cls"): tanh(W @ h_cls + b).  Tiny (B,H)@(H,H) matmul,
    # run as plain XLA (a dedicated kernel would be pure launch overhead).
    cls = hs[-1].reshape(B, S, H)[:, 0, :].astype(jnp.float32)
    pooled = jnp.tanh(cls @ p["pooler_w"] + p["pooler_b"])

    # head: mean(stack(hs[-1..-4]), 0) -> dropout(identity) -> fc -> split
    logits = tweet_head(hs[-1], hs[-2], hs[-3], hs[-4],
                        p["fc_w_pad"], p["fc_b_pad"], 2).reshape(B, S, 2)
    start_logits = logits[..., 0]
    end_logits = logits[..., 1]
    return start_logits, end_logits, pooled


# ----------------------------------------------------------------------------
if __name__ == "__main__":
    B, S = 2, 8
    VOCAB, HIDDEN, LAYERS, HEADS, INTER, MAX_POS = 100, 32, 4, 4, 64, 64

    key = jax.random.PRNGKey(0)
    k_param, k_ids = jax.random.split(key)
    params = init_params(k_param, VOCAB, HIDDEN, LAYERS, HEADS, INTER, MAX_POS)

    input_ids = jax.random.randint(k_ids, (B, S), 0, VOCAB, dtype=jnp.int32)
    attention_mask = jnp.ones((B, S), jnp.int32).at[1, S - 2:].set(0)

    start_logits, end_logits, len_cls = tweet_model_forward(
        params, input_ids, attention_mask, HEADS)
    jax.block_until_ready((start_logits, end_logits, len_cls))

    assert start_logits.shape == (B, S)
    assert end_logits.shape == (B, S)
    assert len_cls.shape == (B, HIDDEN)
    print("KERNEL_OK")
</pallas_src>

<mosaic_0001>
module attributes {stable_mosaic.version = 11 : i64} {
  func.func @_linear_kernel(%arg0: i32, %arg1: memref<16x32xbf16, #tpu.memory_space<vmem>>, %arg2: memref<32x96xbf16, #tpu.memory_space<vmem>>, %arg3: memref<1x96xf32, #tpu.memory_space<vmem>>, %arg4: memref<16x96xbf16, #tpu.memory_space<vmem>>) attributes {dimension_semantics = [#tpu.dimension_semantics<parallel>], iteration_bounds = array<i64: 1>, scalar_prefetch = 0 : i64, scratch_operands = 0 : i64, tpu.core_type = #tpu.core_type<tc>, window_params = [{transform_indices = @transform_0, window_bounds = array<i64: 16, 32>}, {pipeline_mode = #tpu.pipeline_mode<synchronous>, transform_indices = @transform_1, window_bounds = array<i64: 32, 96>}, {pipeline_mode = #tpu.pipeline_mode<synchronous>, transform_indices = @transform_2, window_bounds = array<i64: 1, 96>}, {transform_indices = @transform_3, window_bounds = array<i64: 16, 96>}]} {
    %c0 = arith.constant 0 : index
    %c0_0 = arith.constant 0 : index
    %0 = vector.load %arg1[%c0, %c0_0] : memref<16x32xbf16, #tpu.memory_space<vmem>>, vector<16x32xbf16>
    %c0_1 = arith.constant 0 : index
    %c0_2 = arith.constant 0 : index
    %1 = vector.load %arg2[%c0_1, %c0_2] : memref<32x96xbf16, #tpu.memory_space<vmem>>, vector<32x96xbf16>
    %cst = arith.constant dense<0.000000e+00> : vector<16x96xf32>
    %2 = tpu.matmul %0, %1, %cst {dimension_numbers = #tpu.dot_dimension_numbers<[1], [0], [0], [1], [0, 0, 1, 1], [], []>} : vector<16x32xbf16>, vector<32x96xbf16>, vector<16x96xf32> -> vector<16x96xf32>
    %c0_3 = arith.constant 0 : index
    %c0_4 = arith.constant 0 : index
    %3 = vector.load %arg3[%c0_3, %c0_4] : memref<1x96xf32, #tpu.memory_space<vmem>>, vector<1x96xf32>
    %4 = vector.broadcast %3 : vector<1x96xf32> to vector<16x96xf32>
    %5 = arith.addf %2, %4 : vector<16x96xf32>
    %6 = arith.truncf %5 : vector<16x96xf32> to vector<16x96xbf16>
    %c0_5 = arith.constant 0 : index
    %c0_6 = arith.constant 0 : index
    %7 = vector.load %arg4[%c0_5, %c0_6] : memref<16x96xbf16, #tpu.memory_space<vmem>>, vector<16x96xbf16>
    tpu.vector_store %arg4[%c0_5, %c0_6], %6 {strides = array<i32>} : memref<16x96xbf16, #tpu.memory_space<vmem>>, vector<16x96xbf16>,
    return
  }
  func.func @transform_0(%arg0: i32) -> (i32, i32) {
    %c0_i32 = arith.constant 0 : i32
    %c0_i32_0 = arith.constant 0 : i32
    return %arg0, %c0_i32 : i32, i32
  }
  func.func @transform_1(%arg0: i32) -> (i32, i32) {
    %c0_i32 = arith.constant 0 : i32
    %c0_i32_0 = arith.constant 0 : i32
    %c0_i32_1 = arith.constant 0 : i32
    return %c0_i32, %c0_i32_0 : i32, i32
  }
  func.func @transform_2(%arg0: i32) -> (i32, i32) {
    %c0_i32 = arith.constant 0 : i32
    %c0_i32_0 = arith.constant 0 : i32
    %c0_i32_1 = arith.constant 0 : i32
    return %c0_i32, %c0_i32_0 : i32, i32
  }
  func.func @transform_3(%arg0: i32) -> (i32, i32) {
    %c0_i32 = arith.constant 0 : i32
    %c0_i32_0 = arith.constant 0 : i32
    return %arg0, %c0_i32 : i32, i32
  }
}

</mosaic_0001>

<bundles_post_ra>
// kernel: tpu_custom_call.1
= control target key start
LH: loop header
LB: loop body
LE: loop exit
PB: predicated region body
PF: predicated region fallthrough
CT: control target
= control target key end

     0   :  { %8 = vsyncpa [#allocation3], 0  ;;  %s325_s0 = inlined_call_operand.hbm [shape: bf16[16,32], index: 0, kind: input, shape index: {}]   ;;  %s326_s1 = inlined_call_operand.hbm [shape: bf16[32,96], index: 1, kind: input, shape index: {}]   ;;  %s327_s2 = inlined_call_operand.vmem [shape: f32[1,96], index: 2, kind: input, shape index: {}]   ;;  %s328_s3 = inlined_call_operand.hbm [shape: bf16[16,96], index: 3, kind: output, shape index: {}]  }
   0x1   :  { %9 = vsyncpa [#allocation6], 0 }
   0x2   :  { %10 = vsyncpa [#allocation4], 0  ;;  %s250_s12 = smov [#allocation2]   ;;  %s178_s16 = scalar_lea.hbm %s325_s0, 128 }
   0x3   :  { %s16_s13 = sshll.u32 %s250_s12, 4  ;;  %p179_p0 = scmp.ne.s32.totalorder %s325_s0, %s178_s16  ;;  %s17_s13 = int_to_ptr.vmem [resolvable:$true] %s16_s13 }
   0x4   :  { %p182_p1 = scmp.lt.u32.totalorder %s178_s16, %s325_s0 }
   0x6   :  { %p184_p2 = pnand %p182_p1, %p179_p0 }
   0x8   :  { %187 = shalt.err (!%p184_p2)
}
   0x9   :  { %s188_s21 = scalar_lea.vmem %s17_s13, 128  ;;  %p193_p4 = scmp.lt.s32.totalorder %s17_s13, %s17_s13 }
   0xa   :  { %p189_p3 = scmp.ne.s32.totalorder %s17_s13, %s188_s21  ;;  %p194_p5 = scmp.lt.s32.totalorder %s188_s21, %s188_s21 }
   0xc   :  { %p195_p6 = por %p194_p5, %p193_p4 }
   0xe   :  { %p196_p7 = pnand %p195_p6, %p189_p3 }
  0x10   :  { %199 = shalt.err (!%p196_p7)
}
  0x11   :  { %s251_s22 = smov 64   ;;  %s252_s23 = smov 4  }
  0x12   :  { %22 = dma.hbm_to_vmem [thread:$0]  %s325_s0, 128, %s17_s13, [#allocation3], %s251_s22, %s251_s22, %s252_s23  }
  0x13   :  { %s253_s26 = smov [#allocation5]   ;;  %s200_s30 = scalar_lea.hbm %s326_s1, 256 }
  0x14   :  { %s28_s27 = sshll.u32 %s253_s26, 4  ;;  %p201_p8 = scmp.ne.s32.totalorder %s326_s1, %s200_s30  ;;  %s29_s27 = int_to_ptr.vmem [resolvable:$true] %s28_s27 }
  0x15   :  { %p204_p9 = scmp.lt.u32.totalorder %s200_s30, %s326_s1 }
  0x17   :  { %p206_p10 = pnand %p204_p9, %p201_p8 }
  0x19   :  { %209 = shalt.err (!%p206_p10)
}
  0x1a   :  { %s210_s8 = scalar_lea.vmem %s29_s27, 256  ;;  %p215_p12 = scmp.lt.s32.totalorder %s29_s27, %s29_s27 }
  0x1b   :  { %p211_p11 = scmp.ne.s32.totalorder %s29_s27, %s210_s8  ;;  %p216_p13 = scmp.lt.s32.totalorder %s210_s8, %s210_s8 }
  0x1d   :  { %p217_p0 = por %p216_p13, %p215_p12 }
  0x1f   :  { %p218_p1 = pnand %p217_p0, %p211_p11 }
  0x21   :  { %221 = shalt.err (!%p218_p1)
}
  0x22   :  { %34 = dma.hbm_to_vmem [thread:$0]  %s326_s1, 256, %s29_s27, [#allocation6], %s251_s22, %s251_s22, %s252_s23  }
  0x23   :  { %244 = dma.done.wait [#allocation3], 128  }
  0x24   :  { %245 = vsyncadd [#allocation3], 4294967168 }
  0x25   :  { %246 = dma.done.wait [#allocation6], 256  }
  0x26   :  { %247 = vsyncadd [#allocation6], 4294967040  ;;  %v254_v0 = vmov 0.0   ;;  %vm255_vm0 = vmmov 0   ;;  %v175_v1 = vld [vmem:[#allocation5] sm:$0xff]   ;;  %v176_v2 = vld [vmem:[#allocation5 + $0x8] sm:$0xff]  }
  0x27   :  { %160 = vmatprep.subr.bf16.mxu0 %v254_v0  ;;  %164 = vmatprep.mubr.msk.bf16.mxu0 %vm255_vm0, %v254_v0  ;;  %v177_v3 = vld [vmem:[#allocation2] sm:$0xff]   ;;  %vm74_vm1 = vcmask 261120   ;;  %vm127_vm2 = vcmask 781312   ;;  %s256_s1 = smov [#allocation7]  }
  0x28   :  { %161 = vmatpush3.bf16.msra.mxu0 %v175_v1  ;;  %v148_v4 = vld [vmem:[%s327_s2] ss:$0 sm:$0xff]  ;;  %s135_s12 = sshll.u32 %s256_s1, 4  ;;  %s136_s12 = int_to_ptr.vmem [resolvable:$true] %s135_s12 }
  0x29   :  { %162 = vmatprep.subr.bf16.mxu0 %v254_v0  ;;  %s222_s13 = scalar_lea.vmem %s136_s12, 128  ;;  %p227_p3 = scmp.lt.s32.totalorder %s136_s12, %s136_s12 }
  0x2a   :  { %p223_p2 = scmp.ne.s32.totalorder %s136_s12, %s222_s13  ;;  %p228_p4 = scmp.lt.s32.totalorder %s222_s13, %s222_s13 }
  0x2c   :  { %163 = vmatpush3.bf16.msra.mxu0 %v176_v2  ;;  %p229_p5 = por %p228_p4, %p227_p3 }
  0x2e   :  { %p230_p6 = pnand %p229_p5, %p223_p2 }
  0x2f   :  { %165 = vmatmul.mubr.msk.bf16.vlgmr.msra.gmra.mrb[0].mxu0 %vm74_vm1, %v177_v3 }
 0x102   :  { %v112_v5 = vpop.f32.mrb[0].mxu0 }
 0x103   :  { %v113_v6 = vadd.f32 %v148_v4, %v112_v5  ;;  %v166_v7 = vpop.f32.mrb[1].mxu0 }
 0x104   :  { %v115_v8 = vpop.f32.mrb[2].mxu0 }
 0x105   :  { %v155_v9 = vpack.c.bf16 %v113_v6, %v113_v6  ;;  %v116_v10 = vadd.f32 %v148_v4, %v115_v8  ;;  %v167_v11 = vpop.f32.mrb[3].mxu0 }
 0x107   :  { %v156_v12 = vpack.c.bf16 %v116_v10, %v116_v10  ;;  %128 = vst.msk [vmem:[#allocation7] sm:$0xf] %vm127_vm2, %v155_v9 }
 0x109   :  { %129 = vst.msk [vmem:[#allocation7 + $0x4] sm:$0xf] %vm127_vm2, %v156_v12 }
 0x10a   :  { %233 = shalt.err (!%p230_p6)
}
 0x10b   :  { %s234_s15 = scalar_lea.hbm %s328_s3, 128 }
 0x10c   :  { %p235_p7 = scmp.ne.s32.totalorder %s328_s3, %s234_s15  ;;  %p238_p8 = scmp.lt.u32.totalorder %s234_s15, %s328_s3 }
 0x10e   :  { %p240_p9 = pnand %p238_p8, %p235_p7 }
 0x110   :  { %243 = shalt.err (!%p240_p9)
}
 0x111   :  { %141 = dma.vmem_to_hbm [thread:$0]  %s136_s12, 128, %s328_s3, [#allocation4], %s251_s22, %s251_s22, %s252_s23  }
 0x112   :  { %248 = dma.done.wait [#allocation4], 128  }
 0x113   :  { %249 = vsyncadd [#allocation4], 4294967168 }
 0x114   :  { %145 = vsyncpa [#allocation3], 1 }
 0x115   :  { %146 = vsyncpa [#allocation6], 1 }
 0x116   :  { %147 = vsyncpa [#allocation4], 1 }

</bundles_post_ra>
